<compile_context>
chip_gen: v5e
topology: v5e:2x2
jax: 0.10.0
libtpu: 0.0.40
codegen_flags: <defaults>
</compile_context>

<pallas_src>
import functools
import math

import jax
import jax.numpy as jnp
from jax import lax
from jax.experimental import pallas as pl
from jax.experimental.pallas import tpu as pltpu


_LANE = 128
_SUBLANE = 8
# Below this many x elements, compute the column sum with one fused XLA reduce
# instead of a pallas_call (launch/pipeline overhead dominates). Kept small so
# the self-test below still exercises the Pallas reduction kernel; the real
# crossover on hardware is far larger.
_SMALL_COLSUM_ELEMS = 4096


def _tpu_budgets():
    """Generation-aware (tile_budget_bytes, vmem_limit_bytes, stage1_splits)."""
    try:
        cap = pltpu.get_tpu_info().vmem_capacity_bytes
    except Exception:
        # No TPU info available -> conservative numbers that fit every part.
        return 16 * 1024 * 1024, 32 * 1024 * 1024, 1
    if cap >= 100 * 1024 * 1024:
        # v5e / v6e: 128 MiB physical VMEM, single TensorCore.
        return 48 * 1024 * 1024, 64 * 1024 * 1024, 1
    # v7x: 64 MiB physical (32 MiB scoped default), 2 TensorCores -> split the
    # stage-1 reduction across them.
    return 24 * 1024 * 1024, 28 * 1024 * 1024, 2


def _pick_tile(n, row_bytes, budget_bytes):
    """Largest multiple-of-8 row tile (<= n) whose double-buffered slab fits
    the VMEM budget. No divisibility requirement: callers use a cdiv grid
    (stage 1 masks the ragged edge in-kernel, stage 2 relies on Pallas
    dropping out-of-bounds writes of the last partial block)."""
    for t in (4096, 2048, 1024, 512, 256, 128, 64, 32, 16, 8):
        if t <= n and 2 * t * row_bytes <= budget_bytes:
            return t
    return min(n, _SUBLANE)


# ----------------------------------------------------------------------------
# Stage 1: per (split c, tile i) accumulate the f32 column sum of an x tile
# into an (8, K) VMEM accumulator using VPU adds only; the sublane collapse
# and the tiny pooled matmul happen wrapper-side.
# ----------------------------------------------------------------------------
def _colsum_kernel(x_ref, out_ref, acc_ref, *, n_rows, tile, bps, need_mask):
    c = pl.program_id(0)
    i = pl.program_id(1)

    @pl.when(i == 0)
    def _init():
        acc_ref[...] = jnp.zeros_like(acc_ref)

    x = x_ref[...].astype(jnp.float32)                                # (tile, K)
    if need_mask:
        # Zero rows >= n_rows so the padded ragged-edge rows (and clamped
        # duplicate blocks on the split axis) contribute nothing. The 1/N
        # applied in the wrapper is the TRUE N.
        row0 = (c * bps + i) * tile
        rows = lax.broadcasted_iota(jnp.int32, x.shape, 0) + row0
        x = jnp.where(rows < n_rows, x, 0.0)

    # Regroup rows as (tile/8, 8, K) -- a pure vreg reinterpretation -- and add
    # the groups on the VPU; no per-step cross-sublane (XLU) reduction.
    acc_ref[...] += x.reshape(tile // _SUBLANE, _SUBLANE, x.shape[-1]).sum(axis=0)

    @pl.when(i == pl.num_programs(1) - 1)
    def _flush():
        out_ref[...] = acc_ref[...]


# ----------------------------------------------------------------------------
# Stage 2: out = base + d_vec_add * pooled   (the "+1" is folded into base)
# Grid: N-tiles, fully parallel (sharded across TensorCores on v7x).
# ----------------------------------------------------------------------------
def _broadcast_kernel(dva_ref, pooled_ref, base_ref, o_ref):
    scale = dva_ref[...].astype(jnp.float32)                          # (tile, 1)
    o_ref[...] = (base_ref[...] + scale * pooled_ref[...]).astype(o_ref.dtype)


def degree_mlp_forward(x, weight, d_vec_add, bias=None, d_vec=None, *, out_dtype=None):
    """Pallas forward. `d_vec` is accepted for API parity but unused (as in the
    reference PyTorch forward). `bias=None` mirrors the bias=False path."""
    del d_vec  # unused in the reference forward
    n, k = x.shape
    k2, f = weight.shape
    assert k == k2, "weight shape mismatch"
    out_dtype = jnp.dtype(out_dtype) if out_dtype is not None else x.dtype

    budget, vmem_limit, n_splits = _tpu_budgets()

    # ------------------- Stage 1: column sum over N -------------------
    if n * k > _SMALL_COLSUM_ELEMS and n >= _SUBLANE:
        tile_r = _pick_tile(n, k * jnp.dtype(x.dtype).itemsize, budget)
        total_blocks = pl.cdiv(n, tile_r)
        splits = max(1, min(n_splits, total_blocks))
        bps = pl.cdiv(total_blocks, splits)          # blocks per split
        need_clamp = splits * bps > total_blocks
        need_mask = (n % tile_r != 0) or need_clamp

        if need_clamp:
            def x_map(c, i):
                # Clamp to a valid block; its rows are >= n so the in-kernel
                # mask zeroes the duplicate contribution.
                return (jnp.minimum(c * bps + i, total_blocks - 1), 0)
        else:
            def x_map(c, i):
                return (c * bps + i, 0)

        x_spec_kwargs = {}
        if tile_r <= 128 and bps >= 4:
            # Small tiles can't hide the HBM DMA at depth 2.
            x_spec_kwargs["pipeline_mode"] = pl.Buffered(3)

        partial = pl.pallas_call(
            functools.partial(_colsum_kernel, n_rows=n, tile=tile_r,
                              bps=bps, need_mask=need_mask),
            out_shape=jax.ShapeDtypeStruct((splits * _SUBLANE, k), jnp.float32),
            grid_spec=pltpu.PrefetchScalarGridSpec(
                num_scalar_prefetch=0,
                grid=(splits, bps),
                in_specs=[pl.BlockSpec((tile_r, k), x_map, **x_spec_kwargs)],
                out_specs=pl.BlockSpec((_SUBLANE, k), lambda c, i: (c, 0)),
                scratch_shapes=[pltpu.VMEM((_SUBLANE, k), jnp.float32)],
            ),
            compiler_params=pltpu.CompilerParams(
                dimension_semantics=("parallel", "arbitrary"),
                vmem_limit_bytes=vmem_limit,
            ),
        )(x)
        colsum = jnp.sum(partial, axis=0, keepdims=True)              # (1, K) f32
    else:
        # Tiny problem: one fused XLA reduce beats a pallas_call launch.
        colsum = jnp.sum(x.astype(jnp.float32), axis=0, keepdims=True)

    # Hoisted tiny matmul: mean(x) @ W at full f32 precision (2*K*F FLOPs).
    mean = colsum * (1.0 / n)                                         # true 1/N
    pooled = jnp.dot(mean, weight.astype(jnp.float32),
                     precision=lax.Precision.HIGHEST)                 # (1, F) f32
    if bias is not None:
        base = pooled + bias.reshape(1, f).astype(jnp.float32)
    else:
        base = pooled

    # ------------------- Stage 2: parallel broadcast write -------------------
    dva2d = d_vec_add.reshape(n, 1)   # native dtype; kernel casts
    if n >= _SUBLANE:
        # Per-row bytes: output row + lane-padded (tile,1) d_vec_add column
        # (a (tile,1) block really occupies tile*128*itemsize in tiled VMEM).
        row_bytes = f * out_dtype.itemsize + _LANE * dva2d.dtype.itemsize
        tile_b = _pick_tile(n, row_bytes, budget)
    else:
        tile_b = n                                     # full-extent block
    grid_b = pl.cdiv(n, tile_b)

    out = pl.pallas_call(
        _broadcast_kernel,
        out_shape=jax.ShapeDtypeStruct((n, f), out_dtype),
        grid_spec=pltpu.PrefetchScalarGridSpec(
            num_scalar_prefetch=0,
            grid=(grid_b,),
            in_specs=[
                pl.BlockSpec((tile_b, 1), lambda i: (i, 0)),   # d_vec_add: tiled
                pl.BlockSpec((1, f), lambda i: (0, 0)),        # pooled: resident
                pl.BlockSpec((1, f), lambda i: (0, 0)),        # base: resident
            ],
            out_specs=pl.BlockSpec((tile_b, f), lambda i: (i, 0)),
        ),
        compiler_params=pltpu.CompilerParams(
            dimension_semantics=("parallel",),
            vmem_limit_bytes=vmem_limit,
        ),
    )(dva2d, pooled, base)

    return out


def reference_forward(x, weight, d_vec_add, bias):
    """Pure-JAX reference mirroring the PyTorch code line-by-line
    (HIGHEST precision so it is a true f32 golden reference)."""
    n = x.shape[0]
    hp = lax.Precision.HIGHEST
    support = jnp.dot(x, weight, precision=hp)
    projection = jnp.ones((1, n), jnp.float32) / n
    output = jnp.dot(projection, support, precision=hp)
    output = jnp.dot((jnp.ones((n,), jnp.float32) + d_vec_add)[:, None],
                     output, precision=hp)
    return output + bias


if __name__ == "__main__":
    # Module hyper-params (small, but large enough to exercise N-tiling, the
    # ragged-edge masking path, partial output blocks, and a lane-dense F=128
    # output):
    in_features = 64
    out_features = 128
    n_nodes = 384            # == `size`

    key = jax.random.PRNGKey(0)
    k_w, k_b, k_d, k_x = jax.random.split(key, 4)

    # Deterministic parameter init, matching reset_parameters():
    stdv = 1.0 / math.sqrt(out_features)
    weight = jax.random.uniform(k_w, (in_features, out_features),
                                jnp.float32, minval=-stdv, maxval=stdv)
    bias = jax.random.uniform(k_b, (out_features,),
                              jnp.float32, minval=-stdv, maxval=stdv)
    d_vec_add = jax.random.uniform(k_d, (n_nodes,),
                                   jnp.float32, minval=-1.0, maxval=1.0)
    coeff = jnp.array([1.0], jnp.float32)  # frozen param, unused in forward

    # Example inputs:
    x = jax.random.normal(k_x, (n_nodes, in_features), jnp.float32)
    d_vec = jnp.zeros((n_nodes,), jnp.float32)  # unused by forward

    out = degree_mlp_forward(x, weight, d_vec_add, bias, d_vec)
    out = jax.block_until_ready(out)

    ref = reference_forward(x, weight, d_vec_add, bias)
    assert out.shape == (n_nodes, out_features)
    # All math is f32 (pooled matmul at HIGHEST precision); only summation
    # order differs from the reference.
    assert jnp.allclose(out.astype(jnp.float32), ref, atol=1e-4, rtol=1e-4), \
        "mismatch vs reference"

    print("KERNEL_OK")
</pallas_src>

<mosaic_0001>
module attributes {stable_mosaic.version = 11 : i64} {
  func.func @_colsum_kernel(%arg0: i32, %arg1: i32, %arg2: memref<256x64xf32, #tpu.memory_space<vmem>>, %arg3: memref<8x64xf32, #tpu.memory_space<vmem>>, %arg4: memref<8x64xf32, #tpu.memory_space<vmem>>) attributes {dimension_semantics = [#tpu.dimension_semantics<parallel>, #tpu.dimension_semantics<arbitrary>], iteration_bounds = array<i64: 1, 2>, scalar_prefetch = 0 : i64, scratch_operands = 1 : i64, tpu.core_type = #tpu.core_type<tc>, window_params = [{transform_indices = @transform_0, window_bounds = array<i64: 256, 64>}, {transform_indices = @transform_1, window_bounds = array<i64: 8, 64>}]} {
    %c0_i32 = arith.constant 0 : i32
    %0 = arith.cmpi eq, %arg1, %c0_i32 : i32
    %1 = arith.extui %0 : i1 to i32
    %c0_i32_0 = arith.constant 0 : i32
    %2 = arith.cmpi ne, %1, %c0_i32_0 : i32
    scf.if %2 {
      %cst_8 = arith.constant 0.000000e+00 : f32
      %22 = vector.broadcast %cst_8 : f32 to vector<8x64xf32>
      %c0_9 = arith.constant 0 : index
      %c0_10 = arith.constant 0 : index
      %23 = vector.load %arg4[%c0_9, %c0_10] : memref<8x64xf32, #tpu.memory_space<vmem>>, vector<8x64xf32>
      tpu.vector_store %arg4[%c0_9, %c0_10], %22 {strides = array<i32>} : memref<8x64xf32, #tpu.memory_space<vmem>>, vector<8x64xf32>,
    } else {
    }
    %c0 = arith.constant 0 : index
    %c0_1 = arith.constant 0 : index
    %3 = vector.load %arg2[%c0, %c0_1] : memref<256x64xf32, #tpu.memory_space<vmem>>, vector<256x64xf32>
    %c2_i32 = arith.constant 2 : i32
    %4 = arith.muli %arg0, %c2_i32 : i32
    %5 = arith.addi %4, %arg1 : i32
    %c256_i32 = arith.constant 256 : i32
    %6 = arith.muli %5, %c256_i32 : i32
    %7 = tpu.iota {dimensions = array<i32: 0>} : vector<256x64xi32>
    %8 = vector.broadcast %6 : i32 to vector<256x64xi32>
    %9 = arith.addi %7, %8 : vector<256x64xi32>
    %c384_i32 = arith.constant 384 : i32
    %10 = vector.broadcast %c384_i32 : i32 to vector<256x64xi32>
    %11 = arith.cmpi slt, %9, %10 : vector<256x64xi32>
    %cst = arith.constant 0.000000e+00 : f32
    %12 = vector.broadcast %cst : f32 to vector<256x64xf32>
    %13 = arith.select %11, %3, %12 : vector<256x64xi1>, vector<256x64xf32>
    %c0_2 = arith.constant 0 : index
    %c0_3 = arith.constant 0 : index
    %14 = vector.load %arg4[%c0_2, %c0_3] : memref<8x64xf32, #tpu.memory_space<vmem>>, vector<8x64xf32>
    %15 = vector.shape_cast %13 : vector<256x64xf32> to vector<32x8x64xf32>
    %cst_4 = arith.constant dense<0.000000e+00> : vector<8x64xf32>
    %16 = vector.multi_reduction <add>, %15, %cst_4 [0] : vector<32x8x64xf32> to vector<8x64xf32>
    %17 = arith.addf %14, %16 : vector<8x64xf32>
    %c0_5 = arith.constant 0 : index
    %c0_6 = arith.constant 0 : index
    %18 = vector.load %arg4[%c0_5, %c0_6] : memref<8x64xf32, #tpu.memory_space<vmem>>, vector<8x64xf32>
    tpu.vector_store %arg4[%c0_5, %c0_6], %17 {strides = array<i32>} : memref<8x64xf32, #tpu.memory_space<vmem>>, vector<8x64xf32>,
    %c1_i32 = arith.constant 1 : i32
    %19 = arith.cmpi eq, %arg1, %c1_i32 : i32
    %20 = arith.extui %19 : i1 to i32
    %c0_i32_7 = arith.constant 0 : i32
    %21 = arith.cmpi ne, %20, %c0_i32_7 : i32
    scf.if %21 {
      %c0_8 = arith.constant 0 : index
      %c0_9 = arith.constant 0 : index
      %22 = vector.load %arg4[%c0_8, %c0_9] : memref<8x64xf32, #tpu.memory_space<vmem>>, vector<8x64xf32>
      %c0_10 = arith.constant 0 : index
      %c0_11 = arith.constant 0 : index
      %23 = vector.load %arg3[%c0_10, %c0_11] : memref<8x64xf32, #tpu.memory_space<vmem>>, vector<8x64xf32>
      tpu.vector_store %arg3[%c0_10, %c0_11], %22 {strides = array<i32>} : memref<8x64xf32, #tpu.memory_space<vmem>>, vector<8x64xf32>,
    } else {
    }
    return
  }
  func.func @transform_0(%arg0: i32, %arg1: i32) -> (i32, i32) {
    %c2_i32 = arith.constant 2 : i32
    %0 = arith.muli %arg0, %c2_i32 : i32
    %1 = arith.addi %0, %arg1 : i32
    %c0_i32 = arith.constant 0 : i32
    %c0_i32_0 = arith.constant 0 : i32
    return %1, %c0_i32 : i32, i32
  }
  func.func @transform_1(%arg0: i32, %arg1: i32) -> (i32, i32) {
    %c0_i32 = arith.constant 0 : i32
    %c0_i32_0 = arith.constant 0 : i32
    return %arg0, %c0_i32 : i32, i32
  }
}

</mosaic_0001>

<bundles_post_ra>
// kernel: tpu_custom_call.1
= control target key start
LH: loop header
LB: loop body
LE: loop exit
PB: predicated region body
PF: predicated region fallthrough
CT: control target
= control target key end

     0   :  { %6 = vsyncpa [#allocation4], 0  ;;  %s574_s6 = smov 0   ;;  %s576_s7 = smov 0   ;;  %s752_s0 = inlined_call_operand.vmem [shape: f32[384,64], index: 0, kind: input, shape index: {}]   ;;  %s753_s1 = inlined_call_operand.hbm [shape: f32[8,64], index: 1, kind: output, shape index: {}]  }
   0x1   :  { %s578_s8 = smov 0  }
   0x2 LB: > { %s461_s9 = sadd.s32 4294967295, %s560_s8   ;;  %s21_s10 = sadd.s32 1, %s556_s7  ;;  %s560_s8 = sphi %s578_s8, %s12_s8   ;;  %s556_s7 = sphi %s576_s7, %s755_s7   ;;  %s552_s6 = sphi %s574_s6, %s754_s6  }
   0x3   : > { %p22_p0 = scmp.ge.s32.totalorder %s21_s10, 2  ;;  %p464_p1 = scmp.ge.s32.totalorder %s560_s8, 1 }
   0x4   : > { %p117_p2 = scmp.lt.s32.totalorder %s560_s8, 3 }
   0x5   : > { %s757_s10 = smov (%p22_p0, %s21_s10), 0 }
   0x6   : > { %p118_p3 = pnand %p464_p1, %p117_p2 }
   0x7   : > { %s465_s11 = sshll.u32 (!%p118_p3), %s552_s6, 5  ;;  %p467_p5 = scmp.ne.s32.totalorder (!%p118_p3), %s552_s6, 0 }
   0x8   : > { %121 = sbr.rel (%p118_p3) target bundleno = 111 (0x6f), region = 24  ;;  %p145_p4 = scmp.lt.s32.totalorder (!%p118_p3), %s465_s11, 47 }
   0xd   : > { %s759_s11 = smov (!%p145_p4, %s465_s11), 47  ;;  %159 = sbr.rel (%p467_p5) target bundleno = 20 (0x14), region = 28 }
   0xe   : > { %s466_s12 = sshll.u32 %s759_s11, 3 }
   0xf   : > { %s599_s15 = scalar_lea.vmem %s752_s0, %s466_s12 }
  0x12   : > { %vm160_vm0 = vcmask 523264   ;;  %v562_v0 = vmov 0.0  }
  0x13   : > { %161 = vst.msk [vmem:[#allocation2] sm:$0xff] %vm160_vm0, %v562_v0 }
  0x14 PF: > { %v197_v1 = vlaneseq  ;;  %s468_s16 = sshll.u32 %s552_s6, 8  ;;  %v162_v14 = vld [vmem:[%s599_s15] sm:$0xff]  ;;  %v163_v15 = vld [vmem:[%s599_s15 + $0x8] sm:$0xff]  ;;  %v164_v16 = vld [vmem:[%s599_s15 + $0x10] sm:$0xff]  ;;  %vm328_vm5 = vcmask 523264   ;;  %p469_p6 = scmp.ne.s32.totalorder %s552_s6, 1 }
  0x15   : > { %v607_v5 = vstv %s468_s16  ;;  %v165_v19 = vld [vmem:[%s599_s15 + $0x18] sm:$0xff]  ;;  %v166_v24 = vld [vmem:[%s599_s15 + $0x20] sm:$0xff]  ;;  %v167_v30 = vld [vmem:[%s599_s15 + $0x28] sm:$0xff] }
  0x16   : > { %v602_v2 = vshrl.u32 %v197_v1, 7  ;;  %v168_v36 = vld [vmem:[%s599_s15 + $0x30] sm:$0xff]  ;;  %v169_v42 = vld [vmem:[%s599_s15 + $0x38] sm:$0xff]  ;;  %v170_v48 = vld [vmem:[%s599_s15 + $0x40] sm:$0xff] }
  0x17   : > { %v171_v54 = vld [vmem:[%s599_s15 + $0x48] sm:$0xff]  ;;  %v172_v60 = vld [vmem:[%s599_s15 + $0x50] sm:$0xff] }
  0x18   : > { %v199_v3 = vadd.s32 8, %v602_v2  ;;  %v200_v4 = vadd.s32 16, %v602_v2  ;;  %v201_v6 = vadd.s32 24, %v602_v2  ;;  %v202_v7 = vadd.s32 32, %v602_v2 }
  0x19   : > { %v231_v8 = vadd.s32 %v607_v5, %v602_v2  ;;  %v203_v11 = vadd.s32 40, %v602_v2  ;;  %v204_v13 = vadd.s32 48, %v602_v2  ;;  %v205_v18 = vadd.s32 56, %v602_v2 }
  0x1a   : > { %v232_v9 = vadd.s32 %v607_v5, %v199_v3  ;;  %v233_v10 = vadd.s32 %v607_v5, %v200_v4  ;;  %v234_v12 = vadd.s32 %v607_v5, %v201_v6  ;;  %v235_v17 = vadd.s32 %v607_v5, %v202_v7  ;;  %v173_v3 = vld [vmem:[%s599_s15 + $0x58] sm:$0xff] }
  0x1b   : > { %vm263_vm1 = vcmp.lt.s32.totalorder %v231_v8, 384  ;;  %v236_v20 = vadd.s32 %v607_v5, %v203_v11  ;;  %v206_v25 = vadd.s32 64, %v602_v2  ;;  %v237_v26 = vadd.s32 %v607_v5, %v204_v13 }
  0x1c   : > { %vm264_vm2 = vcmp.lt.s32.totalorder %v232_v9, 384  ;;  %vm265_vm3 = vcmp.lt.s32.totalorder %v233_v10, 384  ;;  %vm266_vm4 = vcmp.lt.s32.totalorder %v234_v12, 384  ;;  %v295_v21 = vsel %vm263_vm1, %v162_v14, 0.0  ;;  %v174_v10 = vld [vmem:[%s599_s15 + $0x60] sm:$0xff] }
  0x1d   : > { %v296_v22 = vsel %vm264_vm2, %v163_v15, 0.0  ;;  %v297_v23 = vsel %vm265_vm3, %v164_v16, 0.0  ;;  %vm267_vm6 = vcmp.lt.s32.totalorder %v235_v17, 384  ;;  %v207_v27 = vadd.s32 72, %v602_v2  ;;  %v175_v16 = vld [vmem:[%s599_s15 + $0x68] sm:$0xff] }
  0x1e   : > { %v238_v28 = vadd.s32 %v607_v5, %v205_v18  ;;  %v298_v29 = vsel %vm266_vm4, %v165_v19, 0.0  ;;  %vm268_vm7 = vcmp.lt.s32.totalorder %v236_v20, 384  ;;  %v329_v31 = vsel %vm328_vm5, %v295_v21, 0.0 }
  0x1f   : > { %v330_v32 = vsel %vm328_vm5, %v296_v22, 0.0  ;;  %v332_v33 = vsel %vm328_vm5, %v297_v23, 0.0  ;;  %v299_v34 = vsel %vm267_vm6, %v166_v24, 0.0  ;;  %v208_v37 = vadd.s32 80, %v602_v2  ;;  %v176_v22 = vld [vmem:[%s599_s15 + $0x70] sm:$0xff] }
  0x20   : > { %v331_v35 = vadd.f32 %v330_v32, %v329_v31  ;;  %v239_v38 = vadd.s32 %v607_v5, %v206_v25  ;;  %vm269_vm8 = vcmp.lt.s32.totalorder %v237_v26, 384  ;;  %v334_v39 = vsel %vm328_vm5, %v298_v29, 0.0 }
  0x21   : > { %v300_v40 = vsel %vm268_vm7, %v167_v30, 0.0  ;;  %v209_v43 = vadd.s32 88, %v602_v2  ;;  %v240_v44 = vadd.s32 %v607_v5, %v207_v27  ;;  %vm270_vm9 = vcmp.lt.s32.totalorder %v238_v28, 384  ;;  %v177_v28 = vld [vmem:[%s599_s15 + $0x78] sm:$0xff] }
  0x22   : > { %v333_v41 = vadd.f32 %v332_v33, %v331_v35  ;;  %v336_v45 = vsel %vm328_vm5, %v299_v34, 0.0  ;;  %v301_v46 = vsel %vm269_vm8, %v168_v36, 0.0  ;;  %v210_v49 = vadd.s32 96, %v602_v2  ;;  %v178_v34 = vld [vmem:[%s599_s15 + $0x80] sm:$0xff] }
  0x23   : > { %v241_v50 = vadd.s32 %v607_v5, %v208_v37  ;;  %vm271_vm10 = vcmp.lt.s32.totalorder %v239_v38, 384  ;;  %v338_v51 = vsel %vm328_vm5, %v300_v40, 0.0  ;;  %v302_v52 = vsel %vm270_vm9, %v169_v42, 0.0  ;;  %v179_v40 = vld [vmem:[%s599_s15 + $0x88] sm:$0xff] }
  0x24   : > { %v335_v47 = vadd.f32 %v334_v39, %v333_v41  ;;  %v211_v55 = vadd.s32 104, %v602_v2  ;;  %v242_v56 = vadd.s32 %v607_v5, %v209_v43  ;;  %vm272_vm11 = vcmp.lt.s32.totalorder %v240_v44, 384 }
  0x25   : > { %v340_v57 = vsel %vm328_vm5, %v301_v46, 0.0  ;;  %v303_v58 = vsel %vm271_vm10, %v170_v48, 0.0  ;;  %v212_v61 = vadd.s32 112, %v602_v2  ;;  %v243_v62 = vadd.s32 %v607_v5, %v210_v49  ;;  %v180_v46 = vld [vmem:[%s599_s15 + $0x90] sm:$0xff] }
  0x26   : > { %v337_v53 = vadd.f32 %v336_v45, %v335_v47  ;;  %vm273_vm12 = vcmp.lt.s32.totalorder %v241_v50, 384  ;;  %v342_v63 = vsel %vm328_vm5, %v302_v52, 0.0  ;;  %v304_v0 = vsel %vm272_vm11, %v171_v54, 0.0  ;;  %v181_v52 = vld [vmem:[%s599_s15 + $0x98] sm:$0xff] }
  0x27   : > { %v213_v4 = vadd.s32 120, %v602_v2  ;;  %v244_v6 = vadd.s32 %v607_v5, %v211_v55  ;;  %vm274_vm13 = vcmp.lt.s32.totalorder %v242_v56, 384  ;;  %v344_v7 = vsel %vm328_vm5, %v303_v58, 0.0  ;;  %v182_v58 = vld [vmem:[%s599_s15 + $0xa0] sm:$0xff] }
  0x28   : > { %v339_v59 = vadd.f32 %v338_v51, %v337_v53  ;;  %v305_v8 = vsel %vm273_vm12, %v172_v60, 0.0  ;;  %v214_v11 = vadd.s32 128, %v602_v2  ;;  %v245_v12 = vadd.s32 %v607_v5, %v212_v61 }
  0x29   : > { %vm275_vm14 = vcmp.lt.s32.totalorder %v243_v62, 384  ;;  %v346_v13 = vsel %vm328_vm5, %v304_v0, 0.0  ;;  %v306_v14 = vsel %vm274_vm13, %v173_v3, 0.0  ;;  %v215_v17 = vadd.s32 136, %v602_v2  ;;  %v183_v0 = vld [vmem:[%s599_s15 + $0xa8] sm:$0xff] }
  0x2a   : > { %v341_v1 = vadd.f32 %v340_v57, %v339_v59  ;;  %v246_v18 = vadd.s32 %v607_v5, %v213_v4  ;;  %vm276_vm15 = vcmp.lt.s32.totalorder %v244_v6, 384  ;;  %v348_v19 = vsel %vm328_vm5, %v305_v8, 0.0  ;;  %v184_v8 = vld [vmem:[%s599_s15 + $0xb0] sm:$0xff] }
  0x2b   : > { %v307_v20 = vsel %vm275_vm14, %v174_v10, 0.0  ;;  %v216_v23 = vadd.s32 144, %v602_v2  ;;  %v247_v24 = vadd.s32 %v607_v5, %v214_v11  ;;  %vm277_vm0 = vcmp.lt.s32.totalorder %v245_v12, 384 }
  0x2c   : > { %v343_v9 = vadd.f32 %v342_v63, %v341_v1  ;;  %v350_v25 = vsel %vm328_vm5, %v306_v14, 0.0  ;;  %v308_v26 = vsel %vm276_vm15, %v175_v16, 0.0  ;;  %v217_v29 = vadd.s32 152, %v602_v2  ;;  %v185_v14 = vld [vmem:[%s599_s15 + $0xb8] sm:$0xff] }
  0x2d   : > { %v248_v30 = vadd.s32 %v607_v5, %v215_v17  ;;  %vm278_vm1 = vcmp.lt.s32.totalorder %v246_v18, 384  ;;  %v352_v31 = vsel %vm328_vm5, %v307_v20, 0.0  ;;  %v309_v32 = vsel %vm277_vm0, %v176_v22, 0.0  ;;  %v186_v20 = vld [vmem:[%s599_s15 + $0xc0] sm:$0xff] }
  0x2e   : > { %v345_v15 = vadd.f32 %v344_v7, %v343_v9  ;;  %v218_v35 = vadd.s32 160, %v602_v2  ;;  %v249_v36 = vadd.s32 %v607_v5, %v216_v23  ;;  %vm279_vm2 = vcmp.lt.s32.totalorder %v247_v24, 384 }
  0x2f   : > { %v354_v37 = vsel %vm328_vm5, %v308_v26, 0.0  ;;  %v310_v38 = vsel %vm278_vm1, %v177_v28, 0.0  ;;  %v219_v41 = vadd.s32 168, %v602_v2  ;;  %v250_v42 = vadd.s32 %v607_v5, %v217_v29  ;;  %v187_v26 = vld [vmem:[%s599_s15 + $0xc8] sm:$0xff] }
  0x30   : > { %v347_v21 = vadd.f32 %v346_v13, %v345_v15  ;;  %vm280_vm3 = vcmp.lt.s32.totalorder %v248_v30, 384  ;;  %v356_v43 = vsel %vm328_vm5, %v309_v32, 0.0  ;;  %v311_v44 = vsel %vm279_vm2, %v178_v34, 0.0  ;;  %v188_v32 = vld [vmem:[%s599_s15 + $0xd0] sm:$0xff] }
  0x31   : > { %v220_v47 = vadd.s32 176, %v602_v2  ;;  %v251_v48 = vadd.s32 %v607_v5, %v218_v35  ;;  %vm281_vm4 = vcmp.lt.s32.totalorder %v249_v36, 384  ;;  %v358_v49 = vsel %vm328_vm5, %v310_v38, 0.0  ;;  %v189_v38 = vld [vmem:[%s599_s15 + $0xd8] sm:$0xff] }
  0x32   : > { %v349_v27 = vadd.f32 %v348_v19, %v347_v21  ;;  %v312_v50 = vsel %vm280_vm3, %v179_v40, 0.0  ;;  %v221_v53 = vadd.s32 184, %v602_v2  ;;  %v252_v54 = vadd.s32 %v607_v5, %v219_v41 }
  0x33   : > { %vm282_vm6 = vcmp.lt.s32.totalorder %v250_v42, 384  ;;  %v360_v55 = vsel %vm328_vm5, %v311_v44, 0.0  ;;  %v313_v56 = vsel %vm281_vm4, %v180_v46, 0.0  ;;  %v222_v59 = vadd.s32 192, %v602_v2  ;;  %v190_v44 = vld [vmem:[%s599_s15 + $0xe0] sm:$0xff] }
  0x34   : > { %v351_v33 = vadd.f32 %v350_v25, %v349_v27  ;;  %v253_v60 = vadd.s32 %v607_v5, %v220_v47  ;;  %vm283_vm7 = vcmp.lt.s32.totalorder %v251_v48, 384  ;;  %v362_v61 = vsel %vm328_vm5, %v312_v50, 0.0 }
  0x35   : > { %v314_v62 = vsel %vm282_vm6, %v181_v52, 0.0  ;;  %v223_v1 = vadd.s32 200, %v602_v2  ;;  %v254_v3 = vadd.s32 %v607_v5, %v221_v53  ;;  %vm284_vm8 = vcmp.lt.s32.totalorder %v252_v54, 384  ;;  %v192_v53 = vld [vmem:[%s599_s15 + $0xf0] sm:$0xff] }
  0x36   : > { %v353_v39 = vadd.f32 %v352_v31, %v351_v33  ;;  %v364_v4 = vsel %vm328_vm5, %v313_v56, 0.0  ;;  %v315_v6 = vsel %vm283_vm7, %v182_v58, 0.0  ;;  %v224_v9 = vadd.s32 208, %v602_v2 }
  0x37   : > { %v255_v10 = vadd.s32 %v607_v5, %v222_v59  ;;  %vm285_vm9 = vcmp.lt.s32.totalorder %v253_v60, 384  ;;  %v366_v11 = vsel %vm328_vm5, %v314_v62, 0.0  ;;  %v316_v12 = vsel %vm284_vm8, %v183_v0, 0.0 }
  0x38   : > { %v355_v45 = vadd.f32 %v354_v37, %v353_v39  ;;  %v225_v15 = vadd.s32 216, %v602_v2  ;;  %v256_v16 = vadd.s32 %v607_v5, %v223_v1  ;;  %vm286_vm10 = vcmp.lt.s32.totalorder %v254_v3, 384 }
  0x39   : > { %v368_v17 = vsel %vm328_vm5, %v315_v6, 0.0  ;;  %v317_v18 = vsel %vm285_vm9, %v184_v8, 0.0  ;;  %v226_v21 = vadd.s32 224, %v602_v2  ;;  %v257_v22 = vadd.s32 %v607_v5, %v224_v9 }
  0x3a   : > { %v357_v51 = vadd.f32 %v356_v43, %v355_v45  ;;  %vm287_vm11 = vcmp.lt.s32.totalorder %v255_v10, 384  ;;  %v370_v23 = vsel %vm328_vm5, %v316_v12, 0.0  ;;  %v318_v24 = vsel %vm286_vm10, %v185_v14, 0.0 }
  0x3b   : > { %v227_v27 = vadd.s32 232, %v602_v2  ;;  %v258_v28 = vadd.s32 %v607_v5, %v225_v15  ;;  %vm288_vm12 = vcmp.lt.s32.totalorder %v256_v16, 384  ;;  %v372_v29 = vsel %vm328_vm5, %v317_v18, 0.0 }
  0x3c   : > { %v359_v57 = vadd.f32 %v358_v49, %v357_v51  ;;  %v319_v30 = vsel %vm287_vm11, %v186_v20, 0.0  ;;  %v228_v33 = vadd.s32 240, %v602_v2  ;;  %v259_v34 = vadd.s32 %v607_v5, %v226_v21  ;;  %v191_v49 = vld [vmem:[%s599_s15 + $0xe8] sm:$0xff] }
  0x3d   : > { %vm289_vm13 = vcmp.lt.s32.totalorder %v257_v22, 384  ;;  %v374_v35 = vsel %vm328_vm5, %v318_v24, 0.0  ;;  %v320_v36 = vsel %vm288_vm12, %v187_v26, 0.0  ;;  %v229_v39 = vadd.s32 248, %v602_v2 }
  0x3e   : > { %v361_v63 = vadd.f32 %v360_v55, %v359_v57  ;;  %v260_v40 = vadd.s32 %v607_v5, %v227_v27  ;;  %vm290_vm14 = vcmp.lt.s32.totalorder %v258_v28, 384  ;;  %v376_v41 = vsel %vm328_vm5, %v319_v30, 0.0  ;;  %v193_v57 = vld [vmem:[%s599_s15 + $0xf8] sm:$0xff] }
  0x3f   : > { %v321_v42 = vsel %vm289_vm13, %v188_v32, 0.0  ;;  %v261_v45 = vadd.s32 %v607_v5, %v228_v33  ;;  %vm291_vm15 = vcmp.lt.s32.totalorder %v259_v34, 384  ;;  %v378_v46 = vsel %vm328_vm5, %v320_v36, 0.0 }
  0x40   : > { %v363_v7 = vadd.f32 %v362_v61, %v361_v63  ;;  %v322_v47 = vsel %vm290_vm14, %v189_v38, 0.0  ;;  %v262_v2 = vadd.s32 %v607_v5, %v229_v39  ;;  %vm292_vm0 = vcmp.lt.s32.totalorder %v260_v40, 384 }
  0x41   : > { %v380_v50 = vsel %vm328_vm5, %v321_v42, 0.0  ;;  %v323_v51 = vsel %vm291_vm15, %v190_v44, 0.0  ;;  %vm293_vm1 = vcmp.lt.s32.totalorder %v261_v45, 384  ;;  %v382_v54 = vsel %vm328_vm5, %v322_v47, 0.0 }
  0x42   : > { %v365_v13 = vadd.f32 %v364_v4, %v363_v7  ;;  %v324_v55 = vsel %vm292_vm0, %v191_v49, 0.0  ;;  %vm294_vm2 = vcmp.lt.s32.totalorder %v262_v2, 384  ;;  %v384_v58 = vsel %vm328_vm5, %v323_v51, 0.0  ;;  %v327_v4 = vld [vmem:[#allocation2] sm:$0xff] }
  0x43   : > { %v325_v59 = vsel %vm293_vm1, %v192_v53, 0.0  ;;  %v386_v61 = vsel %vm328_vm5, %v324_v55, 0.0  ;;  %v326_v5 = vsel %vm294_vm2, %v193_v57, 0.0 }
  0x44   : > { %v367_v19 = vadd.f32 %v366_v11, %v365_v13  ;;  %v388_v63 = vsel %vm328_vm5, %v325_v59, 0.0  ;;  %v390_v1 = vsel %vm328_vm5, %v326_v5, 0.0 }
  0x46   : > { %v369_v25 = vadd.f32 %v368_v17, %v367_v19 }
  0x48   : > { %v371_v31 = vadd.f32 %v370_v23, %v369_v25 }
  0x4a   : > { %v373_v37 = vadd.f32 %v372_v29, %v371_v31 }
  0x4c   : > { %v375_v43 = vadd.f32 %v374_v35, %v373_v37 }
  0x4e   : > { %v377_v48 = vadd.f32 %v376_v41, %v375_v43 }
  0x50   : > { %v379_v52 = vadd.f32 %v378_v46, %v377_v48 }
  0x52   : > { %v381_v56 = vadd.f32 %v380_v50, %v379_v52 }
  0x54   : > { %v383_v60 = vadd.f32 %v382_v54, %v381_v56 }
  0x56   : > { %v385_v62 = vadd.f32 %v384_v58, %v383_v60 }
  0x58   : > { %v387_v0 = vadd.f32 %v386_v61, %v385_v62 }
  0x5a   : > { %v389_v3 = vadd.f32 %v388_v63, %v387_v0 }
  0x5c   : > { %v391_v6 = vadd.f32 %v390_v1, %v389_v3  ;;  %397 = sbr.rel (%p469_p6) target bundleno = 105 (0x69), region = 32 }
  0x5e   : > { %v392_v7 = vadd.f32 %v391_v6, %v327_v4 }
  0x60   : > { %393 = vst.msk [vmem:[#allocation2] sm:$0xff] %vm328_vm5, %v392_v7 }
  0x67   : > { %v398_v8 = vld [vmem:[#allocation2] sm:$0xff] }
  0x68   : > { %399 = vst.msk [vmem:[#allocation3] sm:$0xff] %vm328_vm5, %v398_v8 }
  0x69 PF: > { %p478_p7 = scmp.eq.s32.totalorder %s461_s9, 1  ;;  %s410_s19 = sshll.u32 %s753_s1, 4  ;;  %s411_s19 = int_to_ptr.hbm [resolvable:$true] %s410_s19 }
  0x6a   : > { %s563_s20 = smov [#allocation3]  }
  0x6b   : > { %s408_s21 = sshll.u32 %s563_s20, 4  ;;  %s409_s21 = int_to_ptr.vmem [resolvable:$true] %s408_s21 }
  0x6c   : > { %475 = dma.vmem_to_hbm [thread:$0]  (%p478_p7), %s409_s21, 128, %s411_s19, [#allocation4]  }
  0x6d   : > { %547 = dma.done.wait (%p478_p7), [#allocation4], 128  }
  0x6e   : > { %549 = vsyncadd (%p478_p7), [#allocation4], 4294967168 }
  0x6f PF: > { %s12_s8 = sadd.s32 1, %s560_s8   ;;  %s754_s6 = smov %s556_s7 }
  0x70   : > { %p9_p8 = scmp.ge.s32.totalorder %s12_s8, 4   ;;  %s755_s7 = smov %s757_s10 }
  0x72   :  { %11 = sbr.rel (!%p9_p8) target bundleno = 2 (0x2), region = 60 }
  0x77   :  { %424 = vsyncpa [#allocation4], 1 }
  0x78   :  { %426 = vsyncpa [#allocation4 + $0x1], 1 }

</bundles_post_ra>
